<compile_context>
chip_gen: v7x
topology: tpu7x:2x2x1
jax: 0.10.0
libtpu: 0.0.40
codegen_flags: <defaults>
</compile_context>

<pallas_src>
import functools

import jax
import jax.numpy as jnp
from jax.experimental import pallas as pl
from jax.experimental.pallas import tpu as pltpu

IGNORE_INDEX = -100  # PyTorch F.nll_loss default


def _nll_partial_kernel(pred_ref, tgt_ref, sum_ref, cnt_ref):
    """One (b, n-tile) step: partial sum of gathered log-probs + valid count.

    pred_ref: (1, C, NT) native dtype -- classes on sublanes, points on lanes.
    tgt_ref:  (1, 1, NT) int32.
    sum_ref / cnt_ref: (1, 1, 8, 128) f32 partial-result tiles.
    """
    pred = pred_ref[0].astype(jnp.float32)       # (C, NT); cast per-tile in-kernel
    tgt = tgt_ref[0]                             # (1, NT) lane-dense targets
    c, nt = pred.shape

    # One-hot gather: mask[c, n] = (c == target[n]).  Iota runs along the
    # sublane (class) axis; the lane-dense target row broadcasts across it.
    class_ids = jax.lax.broadcasted_iota(jnp.int32, (c, nt), 0)
    mask = class_ids == tgt                      # (C, NT) bool

    picked = jnp.where(mask, pred, 0.0)
    tile_sum = jnp.sum(picked)                        # scalar f32
    tile_cnt = jnp.sum(jnp.where(mask, 1.0, 0.0))     # == #valid (non-ignored) targets

    # Lane-dense, fully (8,128)-aligned partial outputs => unmasked stores.
    sum_ref[...] = jnp.full((1, 1, 8, 128), tile_sum, dtype=jnp.float32)
    cnt_ref[...] = jnp.full((1, 1, 8, 128), tile_cnt, dtype=jnp.float32)


def _auto_n_tile(n, c, itemsize, vmem_budget_bytes=2 * 1024 * 1024):
    """Pick the N-tile so one pred buffer is ~2 MiB of VMEM (double-buffered
    => ~4 MiB): inside every generation's default scoped VMEM, yet large
    enough to amortize the ~0.35 us per-grid-step overhead."""
    c_sub = max(8, ((c + 7) // 8) * 8)           # sublane-padded class count
    per_lane = c_sub * max(int(itemsize), 4)     # conservative f32 footprint
    cand = max(128, (vmem_budget_bytes // per_lane) // 128 * 128)
    n_up = ((n + 127) // 128) * 128
    return int(min(cand, n_up))


@functools.partial(jax.jit, static_argnames=("n_tile",))
def get_loss(pred, target, n_tile=None):
    """pred: (B, N, C) log-probs (any float dtype); target: (B, N) ints."""
    B, N, C = pred.shape
    if n_tile is None:
        n_tile = _auto_n_tile(N, C, jnp.dtype(pred.dtype).itemsize)
    n_pad = ((N + n_tile - 1) // n_tile) * n_tile
    g = n_pad // n_tile

    # Mirror the module's permute(0, 2, 1): classes -> sublanes, points -> lanes.
    # (If the producer can emit (B, C, N) directly, this transpose disappears.)
    pred_t = jnp.transpose(pred, (0, 2, 1))      # (B, C, N), native dtype
    tgt = target.astype(jnp.int32)
    if n_pad != N:
        pred_t = jnp.pad(pred_t, ((0, 0), (0, 0), (0, n_pad - N)))
        tgt = jnp.pad(tgt, ((0, 0), (0, n_pad - N)), constant_values=IGNORE_INDEX)
    tgt = tgt[:, None, :]                        # (B, 1, n_pad)

    out_sds = jax.ShapeDtypeStruct((B, g, 8, 128), jnp.float32)
    part_sum, part_cnt = pl.pallas_call(
        _nll_partial_kernel,
        grid=(B, g),
        in_specs=[
            pl.BlockSpec((1, C, n_tile), lambda b, j: (b, 0, j)),
            pl.BlockSpec((1, 1, n_tile), lambda b, j: (b, 0, j)),
        ],
        out_specs=(
            pl.BlockSpec((1, 1, 8, 128), lambda b, j: (b, j, 0, 0)),
            pl.BlockSpec((1, 1, 8, 128), lambda b, j: (b, j, 0, 0)),
        ),
        out_shape=(out_sds, out_sds),
        compiler_params=pltpu.CompilerParams(
            dimension_semantics=("parallel", "parallel")),
        cost_estimate=pl.CostEstimate(
            flops=3 * B * n_pad * C,
            transcendentals=0,
            bytes_accessed=(pred_t.size * pred_t.dtype.itemsize
                            + tgt.size * 4 + 2 * B * g * 8 * 128 * 4)),
    )(pred_t, tgt)

    total = jnp.sum(part_sum[:, :, 0, 0])
    count = jnp.sum(part_cnt[:, :, 0, 0])
    # NLL with mean reduction over non-ignored points (PyTorch semantics).
    return -total / count


if __name__ == "__main__":
    key = jax.random.PRNGKey(0)
    B, N, C = 2, 300, 4        # batch, points per cloud, classes (small demo)

    k1, k2 = jax.random.split(key)
    logits = jax.random.normal(k1, (B, N, C), dtype=jnp.float32)
    pred = jax.nn.log_softmax(logits, axis=-1)   # NLLLoss expects log-probs
    target = jax.random.randint(k2, (B, N), 0, C, dtype=jnp.int32)

    # n_tile=128 -> grid (2, 3): exercises multi-step tiling + N padding
    # (300 -> 384, padded targets carry ignore_index and are excluded).
    loss = get_loss(pred, target, n_tile=128)
    jax.block_until_ready(loss)

    # Pure-JAX reference.
    picked = jnp.take_along_axis(pred, target[:, :, None], axis=-1)[..., 0]
    ref = -jnp.mean(picked)
    assert jnp.allclose(loss, ref, rtol=1e-5, atol=1e-5), (loss, ref)

    print("KERNEL_OK")
</pallas_src>

<mosaic_0001>
module attributes {stable_mosaic.version = 11 : i64} {
  func.func @_nll_partial_kernel(%arg0: i32, %arg1: i32, %arg2: memref<1x4x128xf32, #tpu.memory_space<vmem>>, %arg3: memref<1x1x128xi32, #tpu.memory_space<vmem>>, %arg4: memref<1x1x8x128xf32, #tpu.memory_space<vmem>>, %arg5: memref<1x1x8x128xf32, #tpu.memory_space<vmem>>) attributes {dimension_semantics = [#tpu.dimension_semantics<parallel>, #tpu.dimension_semantics<parallel>], iteration_bounds = array<i64: 2, 3>, scalar_prefetch = 0 : i64, scratch_operands = 0 : i64, tpu.core_type = #tpu.core_type<tc>, window_params = [{transform_indices = @transform_0, window_bounds = array<i64: 1, 4, 128>}, {transform_indices = @transform_1, window_bounds = array<i64: 1, 1, 128>}, {transform_indices = @transform_2, window_bounds = array<i64: 1, 1, 8, 128>}, {transform_indices = @transform_3, window_bounds = array<i64: 1, 1, 8, 128>}]} {
    %c0 = arith.constant 0 : index
    %c0_0 = arith.constant 0 : index
    %c0_1 = arith.constant 0 : index
    %0 = vector.load %arg2[%c0, %c0_0, %c0_1] : memref<1x4x128xf32, #tpu.memory_space<vmem>>, vector<1x4x128xf32>
    %1 = vector.shape_cast %0 : vector<1x4x128xf32> to vector<4x128xf32>
    %c0_2 = arith.constant 0 : index
    %c0_3 = arith.constant 0 : index
    %c0_4 = arith.constant 0 : index
    %2 = vector.load %arg3[%c0_2, %c0_3, %c0_4] : memref<1x1x128xi32, #tpu.memory_space<vmem>>, vector<1x1x128xi32>
    %3 = vector.shape_cast %2 : vector<1x1x128xi32> to vector<1x128xi32>
    %4 = tpu.iota {dimensions = array<i32: 0>} : vector<4x128xi32>
    %5 = vector.broadcast %3 : vector<1x128xi32> to vector<4x128xi32>
    %6 = arith.cmpi eq, %4, %5 : vector<4x128xi32>
    %cst = arith.constant 0.000000e+00 : f32
    %7 = vector.broadcast %cst : f32 to vector<4x128xf32>
    %8 = arith.select %6, %1, %7 : vector<4x128xi1>, vector<4x128xf32>
    %9 = vector.shape_cast %8 : vector<4x128xf32> to vector<1x4x128xf32>
    %cst_5 = arith.constant dense<0.000000e+00> : vector<1xf32>
    %10 = vector.multi_reduction <add>, %9, %cst_5 [1, 2] : vector<1x4x128xf32> to vector<1xf32>
    %11 = vector.shape_cast %10 : vector<1xf32> to vector<1x1x1xf32>
    %12 = vector.extract %11[0, 0, 0] : f32 from vector<1x1x1xf32>
    %cst_6 = arith.constant 1.000000e+00 : f32
    %cst_7 = arith.constant 0.000000e+00 : f32
    %13 = vector.broadcast %cst_6 : f32 to vector<4x128xf32>
    %14 = vector.broadcast %cst_7 : f32 to vector<4x128xf32>
    %15 = arith.select %6, %13, %14 : vector<4x128xi1>, vector<4x128xf32>
    %16 = vector.shape_cast %15 : vector<4x128xf32> to vector<1x4x128xf32>
    %cst_8 = arith.constant dense<0.000000e+00> : vector<1xf32>
    %17 = vector.multi_reduction <add>, %16, %cst_8 [1, 2] : vector<1x4x128xf32> to vector<1xf32>
    %18 = vector.shape_cast %17 : vector<1xf32> to vector<1x1x1xf32>
    %19 = vector.extract %18[0, 0, 0] : f32 from vector<1x1x1xf32>
    %20 = vector.broadcast %12 : f32 to vector<1x1x8x128xf32>
    %c0_9 = arith.constant 0 : index
    %c0_10 = arith.constant 0 : index
    %c0_11 = arith.constant 0 : index
    %c0_12 = arith.constant 0 : index
    %21 = vector.load %arg4[%c0_9, %c0_10, %c0_11, %c0_12] : memref<1x1x8x128xf32, #tpu.memory_space<vmem>>, vector<1x1x8x128xf32>
    tpu.vector_store %arg4[%c0_9, %c0_10, %c0_11, %c0_12], %20 {strides = array<i32>} : memref<1x1x8x128xf32, #tpu.memory_space<vmem>>, vector<1x1x8x128xf32>,
    %22 = vector.broadcast %19 : f32 to vector<1x1x8x128xf32>
    %c0_13 = arith.constant 0 : index
    %c0_14 = arith.constant 0 : index
    %c0_15 = arith.constant 0 : index
    %c0_16 = arith.constant 0 : index
    %23 = vector.load %arg5[%c0_13, %c0_14, %c0_15, %c0_16] : memref<1x1x8x128xf32, #tpu.memory_space<vmem>>, vector<1x1x8x128xf32>
    tpu.vector_store %arg5[%c0_13, %c0_14, %c0_15, %c0_16], %22 {strides = array<i32>} : memref<1x1x8x128xf32, #tpu.memory_space<vmem>>, vector<1x1x8x128xf32>,
    return
  }
  func.func @transform_0(%arg0: i32, %arg1: i32) -> (i32, i32, i32) {
    %c0_i32 = arith.constant 0 : i32
    %c0_i32_0 = arith.constant 0 : i32
    return %arg0, %c0_i32, %arg1 : i32, i32, i32
  }
  func.func @transform_1(%arg0: i32, %arg1: i32) -> (i32, i32, i32) {
    %c0_i32 = arith.constant 0 : i32
    %c0_i32_0 = arith.constant 0 : i32
    return %arg0, %c0_i32, %arg1 : i32, i32, i32
  }
  func.func @transform_2(%arg0: i32, %arg1: i32) -> (i32, i32, i32, i32) {
    %c0_i32 = arith.constant 0 : i32
    %c0_i32_0 = arith.constant 0 : i32
    %c0_i32_1 = arith.constant 0 : i32
    return %arg0, %arg1, %c0_i32, %c0_i32_0 : i32, i32, i32, i32
  }
  func.func @transform_3(%arg0: i32, %arg1: i32) -> (i32, i32, i32, i32) {
    %c0_i32 = arith.constant 0 : i32
    %c0_i32_0 = arith.constant 0 : i32
    %c0_i32_1 = arith.constant 0 : i32
    return %arg0, %arg1, %c0_i32, %c0_i32_0 : i32, i32, i32, i32
  }
}

</mosaic_0001>

<bundles_post_ra>
// kernel: get_loss.1
= control target key start
LH: loop header
LB: loop body
LE: loop exit
PB: predicated region body
PF: predicated region fallthrough
CT: control target
= control target key end

     0   :  { %s553_s12 = smov 0   ;;  %s555_s13 = smov 0   ;;  %s615_s0 = inlined_call_operand.vmem [shape: f32[2,4,384], index: 0, kind: input, shape index: {}]   ;;  %s616_s1 = inlined_call_operand.vmem [shape: s32[2,1,384], index: 1, kind: input, shape index: {}]   ;;  %s617_s2 = inlined_call_operand.vmem [shape: f32[2,3,8,128], index: 2, kind: output, shape index: {0}]   ;;  %s618_s3 = inlined_call_operand.vmem [shape: f32[2,3,8,128], index: 3, kind: output, shape index: {1}]  }
   0x1   :  { %s557_s14 = smov 0   ;;  %s559_s15 = smov 0  }
   0x2   :  { %s561_s16 = smov 0  }
   0x3 LB: > { %s23_s17 = sadd.s32 1, %s522_s14  ;;  %s26_s18 = sadd.s32 1, %s526_s15  ;;  %s530_s16 = sphi %s561_s16, %s14_s16   ;;  %s526_s15 = sphi %s559_s15, %s622_s15   ;;  %s522_s14 = sphi %s557_s14, %s621_s14   ;;  %s518_s13 = sphi %s555_s13, %s620_s13   ;;  %s514_s12 = sphi %s553_s12, %s619_s12  }
   0x4   : > { %p24_p0 = scmp.ge.s32.totalorder %s23_s17, 3  ;;  %p439_p1 = scmp.ge.s32.totalorder %s530_s16, 1 }
   0x5   : > { %p175_p2 = scmp.lt.s32.totalorder %s530_s16, 7 }
   0x6   : > { %s624_s17 = smov (%p24_p0, %s23_s17), 0  ;;  %s626_s18 = smov (!%p24_p0, %s26_s18), %s526_s15 }
   0x7   : > { %p176_p3 = pnand %p439_p1, %p175_p2  ;;  %p28_p4 = scmp.ge.s32.totalorder %s626_s18, 2 }
   0x8   : > { %p220_p5 = scmp.lt.s32.totalorder (!%p176_p3), %s518_s13, 1  ;;  %p222_p6 = scmp.lt.s32.totalorder (!%p176_p3), %s514_s12, 2  ;;  %v253_v0 = vlaneseq (!%p176_p3)  ;;  %vm261_vm0 = vcmask (!%p176_p3), 1043456   ;;  %v532_v5 = vmov (!%p176_p3), 0.0  }
   0x9   : > { %s628_s18 = smov (%p28_p4, %s626_s18), 0  ;;  %179 = sbr.rel (%p176_p3) target bundleno = 235 (0xeb), region = 28 }
   0xa   : > { %v254_v1 = vshrl.u32 (!%p176_p3), %v253_v0, 7 }
  0x10   : > { %s630_s13 = smov (!%p220_p5, %s518_s13), 1  ;;  %s632_s12 = smov (!%p222_p6, %s514_s12), 2 }
  0x11   : > { %s446_s19 = smul.u32 3, %s630_s13 }
  0x13   : > { %s583_s20 = sadd.s32 %s446_s19, %s632_s12 }
  0x14   : > { %s440_s21 = sshll.u32 %s583_s20, 2  ;;  %s234_s24 = scalar_lea.vmem %s616_s1, %s583_s20 }
  0x15   : > { %s227_s27 = scalar_lea.vmem %s615_s0, %s440_s21  ;;  %v443_v2 = vld [vmem:[%s234_s24] ss:$0 sm:$0xff]  ;;  %s441_s28 = sshll.u32 %s583_s20, 3 }
  0x16   : > { %v251_v3 = vld [vmem:[%s227_s27] sm:$0xf]  ;;  %vm259_vm1 = vcmp.eq.s32.totalorder %v254_v1, %v443_v2  ;;  %s242_s4 = scalar_lea.vmem %s617_s2, %s441_s28  ;;  %s250_s8 = scalar_lea.vmem %s618_s3, %s441_s28 }
  0x17   : > { %v260_v4 = vsel %vm259_vm1, %v251_v3, 0.0  ;;  %v272_v6 = vsel %vm259_vm1, 1.0, %v532_v5 }
  0x18   : > { %v262_v7 = vsel %vm261_vm0, %v260_v4, 0.0  ;;  %v273_v8 = vsel %vm261_vm0, %v272_v6, 0.0 }
  0x19   : > { %263 = vadd.xlane.f32.xlu0 %v262_v7 }
  0x1d   : > { %274 = vadd.xlane.f32.xlu0 %v273_v8 }
  0xa6   : > { %v264_v9 = vpop.xlane.xlu0 %263 }
  0xa7   : > { %v265_v10 = vrot.slane %v264_v9, 4 }
  0xa9   : > { %v266_v11 = vadd.f32 %v265_v10, %v264_v9 }
  0xaa   : > { %v275_v12 = vpop.xlane.xlu0 %274 }
  0xab   : > { %v267_v13 = vrot.slane %v266_v11, 2  ;;  %v276_v14 = vrot.slane %v275_v12, 4 }
  0xad   : > { %v277_v15 = vadd.f32 %v276_v14, %v275_v12  ;;  %v268_v16 = vadd.f32 %v267_v13, %v266_v11 }
  0xaf   : > { %v278_v17 = vrot.slane %v277_v15, 2  ;;  %v269_v18 = vrot.slane %v268_v16, 1 }
  0xb1   : > { %v279_v19 = vadd.f32 %v278_v17, %v277_v15  ;;  %v270_v20 = vadd.f32 %v269_v18, %v268_v16 }
  0xb3   : > { %447 = vpush %v270_v20  ;;  %v280_v21 = vrot.slane %v279_v19, 1 }
  0xb5   : > { %v281_v22 = vadd.f32 %v280_v21, %v279_v19 }
  0xb7   : > { %449 = vpush %v281_v22 }
  0xe4   : > { %s448_s5 = spop %447 }
  0xe5   : > { %v283_v23 = vstv %s448_s5 }
  0xe6   : > { %284 = vst [vmem:[%s242_s4] sm:$0xff] %v283_v23 }
  0xe8   : > { %s450_s9 = spop %449 }
  0xe9   : > { %v285_v24 = vstv %s450_s9 }
  0xea   : > { %286 = vst [vmem:[%s250_s8] sm:$0xff] %v285_v24 }
  0xeb PF: > { %s14_s16 = sadd.s32 1, %s530_s16   ;;  %s619_s12 = smov %s522_s14 }
  0xec   : > { %p11_p7 = scmp.ge.s32.totalorder %s14_s16, 8   ;;  %s620_s13 = smov %s526_s15 }
  0xed   : > { %s621_s14 = smov %s624_s17  ;;  %s622_s15 = smov %s628_s18 }
  0xee   :  { %13 = sbr.rel (!%p11_p7) target bundleno = 3 (0x3), region = 73 }

</bundles_post_ra>
